<compile_context>
chip_gen: v7x
topology: tpu7x:2x2x1
jax: 0.10.0
libtpu: 0.0.40
codegen_flags: <defaults>
</compile_context>

<pallas_src>
import functools

import jax
import jax.numpy as jnp
from jax.experimental import pallas as pl
from jax.experimental.pallas import tpu as pltpu


def _round_up(x, m):
    return (x + m - 1) // m * m


# ---------------------------------------------------------------------------
# Pallas kernel: fused (1x1 conv * BN-scale folded) + shift + ReLU, L layers,
#                then neighbor max-pool (unrolled VPU max over row chunks).
# ---------------------------------------------------------------------------
def _make_td_kernel(n_layers):
    def kernel(feat_ref, *refs):
        out_ref = refs[-1]
        prm = refs[:-1]
        nnb, ts, cin = feat_ref.shape
        # Merge the two leading (non-lane) dims: ts % 8 == 0, so this does not
        # cross (8,128) vreg tiling -> no relayout.
        h = feat_ref[...].reshape(nnb * ts, cin)            # bf16
        for l in range(n_layers):
            w = prm[2 * l][...]                             # (C_l, C_{l+1}) bf16, BN scale folded in
            b = prm[2 * l + 1][...]                         # (1, C_{l+1})  f32, conv bias + BN shift
            acc = jnp.dot(h, w, preferred_element_type=jnp.float32)
            acc = jnp.maximum(acc + b, 0.0)                 # single add + relu (scale pre-folded)
            h = acc.astype(jnp.bfloat16) if (l + 1) < n_layers else acc
        # Neighbor max: neighbors occupy contiguous, 8-aligned row chunks, so an
        # unrolled elementwise maximum stays on the VPU (no reshape, no XLU).
        m = h[0 * ts:1 * ts, :]
        for j in range(1, nnb):
            m = jnp.maximum(m, h[j * ts:(j + 1) * ts, :])
        out_ref[...] = m
    return kernel


def transition_down_mlp(feat, weights, shifts, *, tile_s=256):
    """feat: (nneighbor, S, C_in) bf16, neighbor-major.  Returns (S, C_out_pad) f32."""
    nnb, S, cin = feat.shape
    n_layers = len(weights)
    c_out_pad = weights[-1].shape[1]                        # already a multiple of 128

    # Large row tiles for the MXU, but keep >= 2 grid steps so both v7x
    # TensorCores get work; tile_s stays a multiple of 8 (sublane tiling).
    tile_s = max(8, min(tile_s, _round_up(pl.cdiv(S, 2), 8)))
    S_pad = _round_up(S, tile_s)
    if S_pad != S:
        feat = jnp.pad(feat, ((0, 0), (0, S_pad - S), (0, 0)))
    grid = (S_pad // tile_s,)

    # Per-step VMEM (double-buffered feat + output, single copy of each weight
    # block with constant index maps) stays far below the 32 MiB scoped default
    # for any realistic (tile_s<=256, C<=1024) configuration, including v7x.
    in_specs = [pl.BlockSpec((nnb, tile_s, cin), lambda i: (0, i, 0))]
    args = [feat]
    for w, b in zip(weights, shifts):
        in_specs.append(pl.BlockSpec(w.shape, lambda i: (0, 0)))   # resident (constant index map)
        in_specs.append(pl.BlockSpec(b.shape, lambda i: (0, 0)))
        args += [w, b]

    out = pl.pallas_call(
        _make_td_kernel(n_layers),
        out_shape=jax.ShapeDtypeStruct((S_pad, c_out_pad), jnp.float32),
        grid=grid,
        in_specs=in_specs,
        out_specs=pl.BlockSpec((tile_s, c_out_pad), lambda i: (i, 0)),
        compiler_params=pltpu.CompilerParams(dimension_semantics=("parallel",)),
    )(*args)
    return out[:S]


# ---------------------------------------------------------------------------
# Plain-JAX glue: FPS, kNN grouping (data-dependent gathers)
# ---------------------------------------------------------------------------
def index_points(points, idx):
    # points: (B, N, C), idx: (B, ...) int -> (B, ..., C)
    return jax.vmap(lambda p, i: p[i])(points, idx)


def square_distance(src, dst):
    # src: (B, S, 3), dst: (B, N, 3) -> (B, S, N)
    return jnp.sum((src[:, :, None, :] - dst[:, None, :, :]) ** 2, axis=-1)


def farthest_point_sample(xyz, npoint):
    # Deterministic start (index 0 per batch); torch uses randint(0, N).
    B, N, _ = xyz.shape

    def body(i, state):
        centroids, distance, farthest = state
        centroids = centroids.at[:, i].set(farthest)
        centroid = index_points(xyz, farthest[:, None])          # (B, 1, 3)
        dist = jnp.sum((xyz - centroid) ** 2, axis=-1)           # (B, N)
        distance = jnp.minimum(distance, dist)
        farthest = jnp.argmax(distance, axis=-1).astype(jnp.int32)
        return centroids, distance, farthest

    centroids = jnp.zeros((B, npoint), dtype=jnp.int32)
    distance = jnp.full((B, N), 1e10, dtype=jnp.float32)
    farthest = jnp.zeros((B,), dtype=jnp.int32)
    centroids, _, _ = jax.lax.fori_loop(0, npoint, body, (centroids, distance, farthest))
    return centroids


@functools.partial(jax.jit, static_argnames=("npoint", "nneighbor", "c_out"))
def transition_down(xyz, points, weights, shifts, *, npoint, nneighbor, c_out):
    """xyz: (B, N, 3), points: (B, N, D).  Returns (new_xyz (B,k,3), feats (B,k,C_out))."""
    B, N, _ = xyz.shape
    fps_idx = farthest_point_sample(xyz, npoint)                 # (B, k)
    new_xyz = index_points(xyz, fps_idx)                         # (B, k, 3)

    dists = square_distance(new_xyz, xyz)                        # (B, k, N)
    _, idx = jax.lax.top_k(-dists, nneighbor)                    # kNN (knn=True), no full argsort

    grouped_xyz = index_points(xyz, idx)                         # (B, k, nn, 3)
    grouped_xyz_norm = grouped_xyz - new_xyz[:, :, None, :]
    grouped_points = index_points(points, idx)                   # (B, k, nn, D)
    new_points = jnp.concatenate([grouped_xyz_norm, grouped_points], axis=-1)  # (B,k,nn,3+D)

    # Neighbor-major, channels-last bf16 layout for the kernel: (nn, B*k, C_in)
    feat = jnp.transpose(new_points, (2, 0, 1, 3)).reshape(nneighbor, B * npoint, -1)
    feat = feat.astype(jnp.bfloat16)

    out = transition_down_mlp(feat, weights, shifts)
    out = out[:, :c_out]                                         # static slice: strip lane padding
    return new_xyz, out.reshape(B, npoint, c_out)


# ---------------------------------------------------------------------------
# Deterministic synthetic parameters (Conv2d 1x1 + BatchNorm2d eval, folded)
# ---------------------------------------------------------------------------
def init_params(key, channels, *, lane=128, eps=1e-5):
    """Fold eval-mode BN into the conv:  y = relu(x @ (w * scale) + shift).
    BN scale goes into the weight columns (bf16 for the MXU), conv bias + BN
    shift into one f32 vector.  The last layer is zero-padded to a multiple of
    128 output channels so the kernel's output store is lane-dense.
    Returns (weights_tuple, shifts_tuple, c_out:int)."""
    weights, shifts = [], []
    last = channels[0]
    n = len(channels) - 1
    for li, c_out in enumerate(channels[1:]):
        key, k1, k2, k3, k4 = jax.random.split(key, 5)
        w = jax.random.normal(k1, (last, c_out), jnp.float32) * 0.1      # conv weight (C_in, C_out)
        conv_b = jax.random.normal(k2, (c_out,), jnp.float32) * 0.1      # conv bias
        gamma = 1.0 + 0.1 * jax.random.normal(k3, (c_out,), jnp.float32)
        beta = 0.1 * jax.random.normal(k4, (c_out,), jnp.float32)
        run_mean = jnp.zeros((c_out,), jnp.float32)
        run_var = jnp.ones((c_out,), jnp.float32)
        scale = gamma / jnp.sqrt(run_var + eps)
        shift = scale * (conv_b - run_mean) + beta
        w_folded = w * scale[None, :]                                    # exact fold
        if li == n - 1:
            c_pad = _round_up(c_out, lane)
            w_folded = jnp.pad(w_folded, ((0, 0), (0, c_pad - c_out)))
            shift = jnp.pad(shift, (0, c_pad - c_out))
        weights.append(w_folded.astype(jnp.bfloat16))
        shifts.append(shift.reshape(1, -1).astype(jnp.float32))
        last = c_out
    return tuple(weights), tuple(shifts), int(channels[-1])


if __name__ == "__main__":
    key = jax.random.PRNGKey(0)
    B, N, D = 2, 16, 5
    npoint, nneighbor = 8, 4
    channels = [3 + D, 16, 32]          # TransitionDown(k=8, nneighbor=4, channels=[8,16,32])

    k_xyz, k_pts, k_par = jax.random.split(key, 3)
    xyz = jax.random.normal(k_xyz, (B, N, 3), jnp.float32)
    points = jax.random.normal(k_pts, (B, N, D), jnp.float32)
    weights, shifts, c_out = init_params(k_par, channels)

    new_xyz, new_points = transition_down(xyz, points, weights, shifts,
                                          npoint=npoint, nneighbor=nneighbor,
                                          c_out=c_out)
    jax.block_until_ready((new_xyz, new_points))
    assert new_xyz.shape == (B, npoint, 3)
    assert new_points.shape == (B, npoint, channels[-1])
    assert bool(jnp.all(jnp.isfinite(new_points)))
    print("KERNEL_OK")
</pallas_src>

<mosaic_0001>
module attributes {stable_mosaic.version = 11 : i64} {
  func.func @kernel(%arg0: i32, %arg1: memref<4x8x8xbf16, #tpu.memory_space<vmem>>, %arg2: memref<8x16xbf16, #tpu.memory_space<vmem>>, %arg3: memref<1x16xf32, #tpu.memory_space<vmem>>, %arg4: memref<16x128xbf16, #tpu.memory_space<vmem>>, %arg5: memref<1x128xf32, #tpu.memory_space<vmem>>, %arg6: memref<8x128xf32, #tpu.memory_space<vmem>>) attributes {dimension_semantics = [#tpu.dimension_semantics<parallel>], iteration_bounds = array<i64: 2>, scalar_prefetch = 0 : i64, scratch_operands = 0 : i64, tpu.core_type = #tpu.core_type<tc>, window_params = [{transform_indices = @transform_0, window_bounds = array<i64: 4, 8, 8>}, {pipeline_mode = #tpu.pipeline_mode<synchronous>, transform_indices = @transform_1, window_bounds = array<i64: 8, 16>}, {pipeline_mode = #tpu.pipeline_mode<synchronous>, transform_indices = @transform_2, window_bounds = array<i64: 1, 16>}, {pipeline_mode = #tpu.pipeline_mode<synchronous>, transform_indices = @transform_3, window_bounds = array<i64: 16, 128>}, {pipeline_mode = #tpu.pipeline_mode<synchronous>, transform_indices = @transform_4, window_bounds = array<i64: 1, 128>}, {transform_indices = @transform_5, window_bounds = array<i64: 8, 128>}]} {
    %c0 = arith.constant 0 : index
    %c0_0 = arith.constant 0 : index
    %c0_1 = arith.constant 0 : index
    %0 = vector.load %arg1[%c0, %c0_0, %c0_1] : memref<4x8x8xbf16, #tpu.memory_space<vmem>>, vector<4x8x8xbf16>
    %1 = vector.shape_cast %0 : vector<4x8x8xbf16> to vector<32x8xbf16>
    %c0_2 = arith.constant 0 : index
    %c0_3 = arith.constant 0 : index
    %2 = vector.load %arg2[%c0_2, %c0_3] : memref<8x16xbf16, #tpu.memory_space<vmem>>, vector<8x16xbf16>
    %c0_4 = arith.constant 0 : index
    %c0_5 = arith.constant 0 : index
    %3 = vector.load %arg3[%c0_4, %c0_5] : memref<1x16xf32, #tpu.memory_space<vmem>>, vector<1x16xf32>
    %cst = arith.constant dense<0.000000e+00> : vector<32x16xf32>
    %4 = tpu.matmul %1, %2, %cst {dimension_numbers = #tpu.dot_dimension_numbers<[1], [0], [0], [1], [0, 0, 1, 1], [], []>} : vector<32x8xbf16>, vector<8x16xbf16>, vector<32x16xf32> -> vector<32x16xf32>
    %5 = vector.broadcast %3 : vector<1x16xf32> to vector<32x16xf32>
    %6 = arith.addf %4, %5 : vector<32x16xf32>
    %cst_6 = arith.constant 0.000000e+00 : f32
    %7 = vector.broadcast %cst_6 : f32 to vector<32x16xf32>
    %8 = arith.maximumf %6, %7 : vector<32x16xf32>
    %9 = arith.truncf %8 : vector<32x16xf32> to vector<32x16xbf16>
    %c0_7 = arith.constant 0 : index
    %c0_8 = arith.constant 0 : index
    %10 = vector.load %arg4[%c0_7, %c0_8] : memref<16x128xbf16, #tpu.memory_space<vmem>>, vector<16x128xbf16>
    %c0_9 = arith.constant 0 : index
    %c0_10 = arith.constant 0 : index
    %11 = vector.load %arg5[%c0_9, %c0_10] : memref<1x128xf32, #tpu.memory_space<vmem>>, vector<1x128xf32>
    %cst_11 = arith.constant dense<0.000000e+00> : vector<32x128xf32>
    %12 = tpu.matmul %9, %10, %cst_11 {dimension_numbers = #tpu.dot_dimension_numbers<[1], [0], [0], [1], [0, 0, 1, 1], [], []>} : vector<32x16xbf16>, vector<16x128xbf16>, vector<32x128xf32> -> vector<32x128xf32>
    %13 = vector.broadcast %11 : vector<1x128xf32> to vector<32x128xf32>
    %14 = arith.addf %12, %13 : vector<32x128xf32>
    %cst_12 = arith.constant 0.000000e+00 : f32
    %15 = vector.broadcast %cst_12 : f32 to vector<32x128xf32>
    %16 = arith.maximumf %14, %15 : vector<32x128xf32>
    %17 = vector.extract_strided_slice %16 {offsets = [0, 0], sizes = [8, 128], strides = [1, 1]} : vector<32x128xf32> to vector<8x128xf32>
    %18 = vector.extract_strided_slice %16 {offsets = [8, 0], sizes = [8, 128], strides = [1, 1]} : vector<32x128xf32> to vector<8x128xf32>
    %19 = arith.maximumf %17, %18 : vector<8x128xf32>
    %20 = vector.extract_strided_slice %16 {offsets = [16, 0], sizes = [8, 128], strides = [1, 1]} : vector<32x128xf32> to vector<8x128xf32>
    %21 = arith.maximumf %19, %20 : vector<8x128xf32>
    %22 = vector.extract_strided_slice %16 {offsets = [24, 0], sizes = [8, 128], strides = [1, 1]} : vector<32x128xf32> to vector<8x128xf32>
    %23 = arith.maximumf %21, %22 : vector<8x128xf32>
    %c0_13 = arith.constant 0 : index
    %c0_14 = arith.constant 0 : index
    %24 = vector.load %arg6[%c0_13, %c0_14] : memref<8x128xf32, #tpu.memory_space<vmem>>, vector<8x128xf32>
    tpu.vector_store %arg6[%c0_13, %c0_14], %23 {strides = array<i32>} : memref<8x128xf32, #tpu.memory_space<vmem>>, vector<8x128xf32>,
    return
  }
  func.func @transform_0(%arg0: i32) -> (i32, i32, i32) {
    %c0_i32 = arith.constant 0 : i32
    %c0_i32_0 = arith.constant 0 : i32
    %c0_i32_1 = arith.constant 0 : i32
    return %c0_i32, %arg0, %c0_i32_0 : i32, i32, i32
  }
  func.func @transform_1(%arg0: i32) -> (i32, i32) {
    %c0_i32 = arith.constant 0 : i32
    %c0_i32_0 = arith.constant 0 : i32
    %c0_i32_1 = arith.constant 0 : i32
    return %c0_i32, %c0_i32_0 : i32, i32
  }
  func.func @transform_2(%arg0: i32) -> (i32, i32) {
    %c0_i32 = arith.constant 0 : i32
    %c0_i32_0 = arith.constant 0 : i32
    %c0_i32_1 = arith.constant 0 : i32
    return %c0_i32, %c0_i32_0 : i32, i32
  }
  func.func @transform_3(%arg0: i32) -> (i32, i32) {
    %c0_i32 = arith.constant 0 : i32
    %c0_i32_0 = arith.constant 0 : i32
    %c0_i32_1 = arith.constant 0 : i32
    return %c0_i32, %c0_i32_0 : i32, i32
  }
  func.func @transform_4(%arg0: i32) -> (i32, i32) {
    %c0_i32 = arith.constant 0 : i32
    %c0_i32_0 = arith.constant 0 : i32
    %c0_i32_1 = arith.constant 0 : i32
    return %c0_i32, %c0_i32_0 : i32, i32
  }
  func.func @transform_5(%arg0: i32) -> (i32, i32) {
    %c0_i32 = arith.constant 0 : i32
    %c0_i32_0 = arith.constant 0 : i32
    return %arg0, %c0_i32 : i32, i32
  }
}

</mosaic_0001>

<bundles_post_ra>
// kernel: custom-call.8
= control target key start
LH: loop header
LB: loop body
LE: loop exit
PB: predicated region body
PF: predicated region fallthrough
CT: control target
= control target key end

     0   :  { %s6_s0 = inlined_call_operand.vmem [shape: f32[2,16], index: 0, kind: output, shape index: {}]  }

// kernel: neg.1
= control target key start
LH: loop header
LB: loop body
LE: loop exit
PB: predicated region body
PF: predicated region fallthrough
CT: control target
= control target key end

     0   :  { %s40_s0 = inlined_call_operand.vmem [shape: f32[2,8,16], index: 0, kind: input, shape index: {}]   ;;  %s41_s1 = inlined_call_operand.vmem [shape: f32[2,8,16], index: 1, kind: output, shape index: {}]  }
   0x1   :  { %v2_v0 = vld [vmem:[%s40_s0] sm:$0xff]  ;;  %v16_v1 = vld [vmem:[%s40_s0 + $0x8] sm:$0xff] }
   0x2   :  { %v5_v2 = vxor.u32 2147483648, %v2_v0  ;;  %v12_v3 = vxor.u32 2147483648, %v16_v1 }
   0x4   :  { %7 = vst [vmem:[%s41_s1] sm:$0xff] %v5_v2  ;;  %17 = vst [vmem:[%s41_s1 + $0x8] sm:$0xff] %v12_v3 }

// kernel: transition_down.1
= control target key start
LH: loop header
LB: loop body
LE: loop exit
PB: predicated region body
PF: predicated region fallthrough
CT: control target
= control target key end

     0   :  { %s623_s18 = smov 0   ;;  %s625_s19 = smov 0   ;;  %s689_s0 = inlined_call_operand.vmem [shape: bf16[4,16,8], index: 0, kind: input, shape index: {}]   ;;  %s690_s1 = inlined_call_operand.vmem [shape: bf16[8,16], index: 1, kind: input, shape index: {}]   ;;  %s691_s2 = inlined_call_operand.vmem [shape: f32[1,16], index: 2, kind: input, shape index: {}]   ;;  %s692_s3 = inlined_call_operand.vmem [shape: bf16[16,128], index: 3, kind: input, shape index: {}]   ;;  %s693_s4 = inlined_call_operand.vmem [shape: f32[1,128], index: 4, kind: input, shape index: {}]   ;;  %s694_s5 = inlined_call_operand.vmem [shape: f32[16,128], index: 5, kind: output, shape index: {}]  }
   0x1   :  { %s627_s20 = smov 0  }
   0x2 LB: > { %s503_s21 = sadd.s32 4294967295, %s591_s20   ;;  %s640_s22 = sadd.s32 1, %s591_s20   ;;  %s591_s20 = sphi %s627_s20, %s697_s20   ;;  %s587_s19 = sphi %s625_s19, %s696_s19   ;;  %s583_s18 = sphi %s623_s18, %s695_s18  }
   0x3   : > { %s19_s23 = ssub.s32 %s591_s20, %s640_s22  ;;  %s22_s24 = sadd.s32 1, %s587_s19 }
   0x4   : > { %p20_p0 = scmp.eq.s32.totalorder %s19_s23, 0  ;;  %p29_p1 = scmp.ne.s32.totalorder %s587_s19, %s583_s18 }
   0x5   : > { %p30_p2 = scmp.eq.s32.totalorder %s591_s20, 0  ;;  %p506_p4 = scmp.ge.s32.totalorder %s591_s20, 2 }
   0x6   : > { %s649_s25 = scalar_select %p20_p0, %s587_s19, %s22_s24  }
   0x7   : > { %p31_p3 = por %p30_p2, %p29_p1  ;;  %177 = sbr.rel (%p506_p4) target bundleno = 21 (0x15), region = 32 }
   0xe   : > { %180 = sbr.rel (!%p31_p3) target bundleno = 21 (0x15), region = 36  ;;  %s182_s26 = sand.u32 (%p31_p3), 1, %s587_s19  }
   0xf   : > { %s508_s27 = sshll.u32 (%p31_p3), %s591_s20, 2  ;;  %s507_s28 = sshll.u32 (%p31_p3), %s182_s26, 4 }
  0x10   : > { %s186_s6 = scalar_lea.vmem (%p31_p3), %s689_s0, %s508_s27  ;;  %s184_s7 = scalar_lea.vmem (%p31_p3), [#allocation2], %s507_s28 }
  0x11   : > { %v202_v0 = vld [vmem:[%s186_s6] sm:$0xf] (%p31_p3)  ;;  %v204_v1 = vld [vmem:[%s186_s6 + $0x8] sm:$0xf] (%p31_p3)  ;;  %v206_v2 = vld [vmem:[%s186_s6 + $0x10] sm:$0xf] (%p31_p3) }
  0x12   : > { %203 = vst [vmem:[%s184_s7] sm:$0xf] (%p31_p3), %v202_v0  ;;  %205 = vst [vmem:[%s184_s7 + $0x4] sm:$0xf] (%p31_p3), %v204_v1  ;;  %v208_v3 = vld [vmem:[%s186_s6 + $0x18] sm:$0xf] (%p31_p3) }
  0x13   : > { %207 = vst [vmem:[%s184_s7 + $0x8] sm:$0xf] (%p31_p3), %v206_v2  ;;  %209 = vst [vmem:[%s184_s7 + $0xc] sm:$0xf] (%p31_p3), %v208_v3 }
  0x15 PF: > { %p509_p5 = scmp.ge.s32.totalorder %s591_s20, 1  ;;  %p239_p6 = scmp.lt.s32.totalorder %s591_s20, 3 }
  0x17   : > { %p240_p7 = pnand %p509_p5, %p239_p6 }
  0x18   : > { %v281_v4 = vld [vmem:[%s690_s1] sm:$0xf] (!%p240_p7)  ;;  %vm306_vm0 = vcmask (!%p240_p7), 1043456   ;;  %s246_s10 = sand.u32 (!%p240_p7), 1, %s583_s18   ;;  %vm299_vm1 = vcmask (!%p240_p7), 64512   ;;  %vm380_vm2 = vcmask (!%p240_p7), 130048  }
  0x19   : > { %243 = sbr.rel (%p240_p7) target bundleno = 477 (0x1dd), region = 77  ;;  %541 = vmatprep.subr.msk.bf16.mxu0 (!%p240_p7), %vm306_vm0, %v281_v4  ;;  %v308_v5 = vsel (!%p240_p7), %vm306_vm0, %v281_v4, 0  ;;  %s510_s11 = sshll.u32 (!%p240_p7), %s246_s10, 4  ;;  %v568_v8 = vld [vmem:[%s692_s3] sm:$0xff] (!%p240_p7)  }
  0x1a   : > { %530 = vmatpush3.bf16.msra.mxu0 (!%p240_p7), %v308_v5  ;;  %s248_s12 = scalar_lea.vmem (!%p240_p7), [#allocation2], %s510_s11  ;;  %535 = vmatprep.subr.bf16.mxu1 (!%p240_p7), %v568_v8  ;;  %v512_v9 = vld [vmem:[%s691_s2] ss:$0 sm:$0xff] (!%p240_p7)  ;;  %p272_p8 = scmp.lt.s32.totalorder (!%p240_p7), %s503_s21, 1 }
  0x1b   : > { %v566_v6 = vld [vmem:[%s248_s12] sm:$0xff] (!%p240_p7)   ;;  %v567_v7 = vld [vmem:[%s248_s12 + $0x8] sm:$0xff] (!%p240_p7)   ;;  %536 = vmatpush3.bf16.msra.mxu1 (!%p240_p7), %v568_v8 }
  0x1c   : > { %531 = vmatprep.mubr.msk.bf16.mxu0 (!%p240_p7), %vm299_vm1, %v566_v6  ;;  %v517_v24 = vld [vmem:[%s693_s4] ss:$0 sm:$0xff] (!%p240_p7) }
  0x1d   : > { %532 = vmatmul.mubr.msk.bf16.vlgmr.msra.gmra.mrb[0].mxu0 (!%p240_p7), %vm299_vm1, %v567_v7 }
  0x20   : > { %s699_s21 = smov (!%p272_p8, %s503_s21), 1 }
  0x21   : > { %s511_s23 = sshll.u32 %s699_s21, 3 }
  0x22   : > { %s275_s27 = scalar_lea.vmem %s694_s5, %s511_s23 }
  0xf0   : > { %v533_v10 = vpop.f32.mrb[0].mxu0 }
  0xf1   : > { %v353_v11 = vadd.f32 %v533_v10, %v512_v9  ;;  %v344_v12 = vpop.f32.mrb[1].mxu0 }
  0xf2   : > { %v345_v13 = vadd.f32 %v512_v9, %v344_v12  ;;  %v534_v14 = vpop.f32.mrb[2].mxu0 }
  0xf3   : > { %v356_v15 = vadd.f32 %v534_v14, %v512_v9  ;;  %v347_v16 = vpop.f32.mrb[3].mxu0  ;;  %v361_v18 = vmax.f32 %v353_v11, 0.0 }
  0xf4   : > { %v348_v17 = vadd.f32 %v512_v9, %v347_v16  ;;  %v359_v20 = vmax.f32 %v345_v13, 0.0 }
  0xf5   : > { %v362_v19 = vmax.f32 %v356_v15, 0.0 }
  0xf6   : > { %v360_v21 = vmax.f32 %v348_v17, 0.0 }
  0xf7   : > { %v364_v22 = vpack.c.bf16 %v362_v19, %v361_v18 }
  0xf8   : > { %v363_v23 = vpack.c.bf16 %v360_v21, %v359_v20 }
  0xfa   : > { %537 = vmatprep.mubr.msk.bf16.mxu1 %vm380_vm2, %v363_v23 }
  0xfb   : > { %538 = vmatmul.mubr.msk.bf16.vlgmr.msra.gmra.mrb[0].mxu1 %vm380_vm2, %v364_v22 }
 0x1ce   : > { %v539_v25 = vpop.f32.mrb[0].mxu1 }
 0x1cf   : > { %v421_v26 = vpop.f32.mrb[1].mxu1  ;;  %v430_v30 = vadd.f32 %v539_v25, %v517_v24 }
 0x1d0   : > { %v422_v27 = vadd.f32 %v517_v24, %v421_v26  ;;  %v540_v28 = vpop.f32.mrb[2].mxu1 }
 0x1d1   : > { %v424_v29 = vpop.f32.mrb[3].mxu1  ;;  %v433_v33 = vadd.f32 %v540_v28, %v517_v24  ;;  %v438_v35 = vmax.f32 %v430_v30, 0.0 }
 0x1d2   : > { %v425_v31 = vadd.f32 %v517_v24, %v424_v29  ;;  %v436_v32 = vmax.f32 %v422_v27, 0.0 }
 0x1d3   : > { %v439_v37 = vmax.f32 %v433_v33, 0.0 }
 0x1d4   : > { %v437_v34 = vmax.f32 %v425_v31, 0.0 }
 0x1d6   : > { %v440_v36 = vmax.f32 %v436_v32, %v437_v34 }
 0x1d8   : > { %v441_v38 = vmax.f32 %v440_v36, %v438_v35 }
 0x1da   : > { %v442_v39 = vmax.f32 %v441_v38, %v439_v37 }
 0x1dc   : > { %443 = vst [vmem:[%s275_s27] sm:$0xff] %v442_v39 }
 0x1dd PF: > { %p12_p9 = scmp.ge.s32.totalorder %s640_s22, 4   ;;  %s695_s18 = smov %s587_s19 }
 0x1de   : > { %s696_s19 = smov %s649_s25  ;;  %s697_s20 = smov %s640_s22 }
 0x1df   :  { %14 = sbr.rel (!%p12_p9) target bundleno = 2 (0x2), region = 116 }

</bundles_post_ra>
